<compile_context>
chip_gen: v6e
topology: v6e:2x2x1
jax: 0.10.0
libtpu: 0.0.40
codegen_flags: <defaults>
</compile_context>

<pallas_src>
import functools

import jax
import jax.numpy as jnp
import numpy as np
from jax.experimental import pallas as pl
from jax.experimental.pallas import tpu as pltpu

_NEG_FILL = -1e30  # "effectively -inf" bias for padded text lanes; exp underflows to exactly 0


def _round_up(n, m):
    return ((n + m - 1) // m) * m


def _log_softmax_f32(z):
    # numerically-stable log_softmax over the last axis (matches torch.nn.LogSoftmax(dim=-1))
    m = jnp.max(z, axis=-1, keepdims=True)
    s = z - m
    lse = jnp.log(jnp.sum(jnp.exp(s), axis=-1, keepdims=True))
    return s - lse


def _empha_kernel(x_ref, w_ref, b_ref, text_ref, emph_ref, *, split):
    # x: (tile_m, D) matmul_dtype; w: (D, Vp+E) matmul_dtype; b: (1, Vp+E) f32
    # text: (tile_m, V) f32; emph: (tile_m, E) f32; split == Vp (multiple of 128)
    z = jnp.dot(x_ref[...], w_ref[...], preferred_element_type=jnp.float32)
    z = z + b_ref[...]                      # bias add in f32

    t = z[:, :split]                        # lane-aligned split of the fused matmul
    e = z[:, split:]

    # Padded text lanes carry weight 0 and bias -1e30, so they vanish from the
    # log_softmax normalization exactly. The module's second log_softmax on the text
    # head is dropped (idempotent).
    t_lp = _log_softmax_f32(t)
    v = text_ref.shape[-1]
    text_ref[...] = t_lp[:, :v] if v != split else t_lp
    emph_ref[...] = _log_softmax_f32(e)


def _vmem_budget_bytes():
    cap = 64 * 1024 * 1024  # conservative default: v7x per-TensorCore VMEM
    try:
        info = pltpu.get_tpu_info()
        cap = int(getattr(info, "vmem_capacity_bytes", cap))
    except Exception:
        pass
    # leave ~25% headroom for compiler-internal scratch / semaphores
    return int(cap * 3 // 4)


def _vmem_estimate(tile_m, d, wtot, v, e, mm_bytes):
    weight = d * wtot * mm_bytes            # single-buffered (Buffered(1))
    bias = wtot * 4                         # single-buffered f32
    x_tile = 2 * tile_m * d * mm_bytes      # double-buffered x row tile
    t_tile = 2 * tile_m * v * 4             # double-buffered text output tile
    e_tile = 2 * tile_m * e * 4             # double-buffered emph output tile
    scratch = 3 * tile_m * wtot * 4         # z / shifted / exp log_softmax intermediates
    return weight + bias + x_tile + t_tile + e_tile + scratch


def empha_text_generator(x, w_out, b_out, w_emph, b_emph, *, tile_m=256,
                         matmul_dtype=jnp.bfloat16):
    """x: (N, D); w_out: (D, V); b_out: (V,); w_emph: (D, E); b_emph: (E,).

    Weights are stored pre-transposed (D, out_features) so the kernel runs x @ W on
    the MXU. Returns (log_probs_text (N, V) f32, log_probs_emph (N, E) f32).
    """
    N, D = x.shape
    V = w_out.shape[1]
    E = w_emph.shape[1]

    mm_bytes = np.dtype(matmul_dtype).itemsize
    row_align = 16 if mm_bytes < 4 else 8       # bf16 sublane packing needs 16-row tiles

    # Text head lane-padded so the fused-matmul split is at a 128-lane boundary;
    # the emph head (5 classes) is left un-padded.
    Vp = _round_up(V, 128)
    Wtot = Vp + E

    # Row tiling: clamp for tiny inputs, then shrink until the VMEM estimate fits the
    # per-chip budget (matters at production vocab sizes, esp. v7x's 64 MiB per TC).
    budget = _vmem_budget_bytes()
    tile_m = max(row_align, _round_up(min(tile_m, _round_up(N, row_align)), row_align))
    while tile_m > row_align and _vmem_estimate(tile_m, D, Wtot, V, E, mm_bytes) > budget:
        tile_m = _round_up(tile_m // 2, row_align)
    Np = _round_up(N, tile_m)

    # Fused two-head weight [W_text_pad | W_emph] in the matmul dtype; padded text
    # columns get zero weight and -1e30 bias so they drop out of log_softmax exactly.
    w_text_p = jnp.zeros((D, Vp), matmul_dtype).at[:, :V].set(w_out.astype(matmul_dtype))
    w_cat = jnp.concatenate([w_text_p, w_emph.astype(matmul_dtype)], axis=1)   # (D, Wtot)
    b_text_p = jnp.full((1, Vp), _NEG_FILL, jnp.float32).at[:, :V].set(
        b_out.astype(jnp.float32)[None, :])
    b_cat = jnp.concatenate([b_text_p, b_emph.astype(jnp.float32)[None, :]], axis=1)

    x_mm = x.astype(matmul_dtype)
    if Np != N:
        x_mm = jnp.pad(x_mm, ((0, Np - N), (0, 0)))

    grid = (Np // tile_m,)
    out_shape = (jax.ShapeDtypeStruct((Np, V), jnp.float32),
                 jax.ShapeDtypeStruct((Np, E), jnp.float32))

    cost = pl.CostEstimate(
        flops=2 * Np * D * Wtot,
        transcendentals=Np * Wtot,
        bytes_accessed=(Np * D * mm_bytes + D * Wtot * mm_bytes + Wtot * 4
                        + Np * V * 4 + Np * E * 4),
    )

    text_p, emph_p = pl.pallas_call(
        functools.partial(_empha_kernel, split=Vp),
        out_shape=out_shape,
        grid_spec=pl.GridSpec(
            grid=grid,
            in_specs=[
                pl.BlockSpec((tile_m, D), lambda i: (i, 0)),           # x row tile
                pl.BlockSpec((D, Wtot), lambda i: (0, 0),
                             pipeline_mode=pl.Buffered(1)),            # resident fused weight
                pl.BlockSpec((1, Wtot), lambda i: (0, 0),
                             pipeline_mode=pl.Buffered(1)),            # resident fused bias
            ],
            out_specs=(
                pl.BlockSpec((tile_m, V), lambda i: (i, 0)),           # text log-probs (un-padded)
                pl.BlockSpec((tile_m, E), lambda i: (i, 0)),           # emph log-probs (un-padded)
            ),
        ),
        compiler_params=pltpu.CompilerParams(
            dimension_semantics=("parallel",),
            vmem_limit_bytes=budget,
        ),
        cost_estimate=cost,
    )(x_mm, w_cat, b_cat)

    if Np != N:   # only pay a row-tail slice when N is not a multiple of tile_m
        text_p = text_p[:N]
        emph_p = emph_p[:N]
    return text_p, emph_p


def _reference(x, w_out, b_out, w_emph, b_emph, matmul_dtype):
    # Mirrors the module math with the same matmul precision as the kernel.
    xm = x.astype(matmul_dtype)
    t = jnp.dot(xm, w_out.astype(matmul_dtype),
                preferred_element_type=jnp.float32) + b_out.astype(jnp.float32)
    t = jax.nn.log_softmax(t, axis=-1)
    t = jax.nn.log_softmax(t, axis=-1)   # module applies gen_func twice to the text head
    e = jnp.dot(xm, w_emph.astype(matmul_dtype),
                preferred_element_type=jnp.float32) + b_emph.astype(jnp.float32)
    e = jax.nn.log_softmax(e, axis=-1)
    return t, e


if __name__ == "__main__":
    # Small, module-consistent shapes:
    #   seq=8, batch=2, dec_rnn_size (d_model)=32, vocab=len(field)=50, emphasis classes=5
    seq, batch, d_model, vocab, n_emph = 8, 2, 32, 50, 5

    key = jax.random.PRNGKey(0)
    k_x, k_wt, k_bt, k_we, k_be = jax.random.split(key, 5)

    # decoder hidden states, flattened over (seq, batch) leading dims (as nn.Linear does)
    inputs = jax.random.normal(k_x, (seq, batch, d_model), dtype=jnp.float32)
    x_flat = inputs.reshape(seq * batch, d_model)

    # deterministic parameter init (nn.Linear-style scale), stored pre-transposed (D, out)
    bound = 1.0 / np.sqrt(d_model)
    w_out = jax.random.uniform(k_wt, (d_model, vocab), jnp.float32, -bound, bound)
    b_out = jax.random.uniform(k_bt, (vocab,), jnp.float32, -bound, bound)
    w_emph = jax.random.uniform(k_we, (d_model, n_emph), jnp.float32, -bound, bound)
    b_emph = jax.random.uniform(k_be, (n_emph,), jnp.float32, -bound, bound)

    text_lp, emph_lp = empha_text_generator(x_flat, w_out, b_out, w_emph, b_emph)
    jax.block_until_ready((text_lp, emph_lp))

    ref_t, ref_e = _reference(x_flat, w_out, b_out, w_emph, b_emph, jnp.bfloat16)
    np.testing.assert_allclose(np.asarray(text_lp), np.asarray(ref_t), atol=3e-5, rtol=3e-5)
    np.testing.assert_allclose(np.asarray(emph_lp), np.asarray(ref_e), atol=3e-5, rtol=3e-5)

    # reshape back to (seq, batch, *) like the PyTorch module would return
    _ = text_lp.reshape(seq, batch, vocab)
    _ = emph_lp.reshape(seq, batch, n_emph)

    print("KERNEL_OK")
</pallas_src>

<mosaic_0001>
module attributes {stable_mosaic.version = 11 : i64} {
  func.func @_empha_kernel(%arg0: i32, %arg1: memref<16x32xbf16, #tpu.memory_space<vmem>>, %arg2: memref<32x133xbf16, #tpu.memory_space<vmem>>, %arg3: memref<1x133xf32, #tpu.memory_space<vmem>>, %arg4: memref<16x50xf32, #tpu.memory_space<vmem>>, %arg5: memref<16x5xf32, #tpu.memory_space<vmem>>) attributes {dimension_semantics = [#tpu.dimension_semantics<parallel>], iteration_bounds = array<i64: 1>, scalar_prefetch = 0 : i64, scratch_operands = 0 : i64, tpu.core_type = #tpu.core_type<tc>, window_params = [{transform_indices = @transform_0, window_bounds = array<i64: 16, 32>}, {pipeline_mode = #tpu.pipeline_mode<synchronous>, transform_indices = @transform_1, window_bounds = array<i64: 32, 133>}, {pipeline_mode = #tpu.pipeline_mode<synchronous>, transform_indices = @transform_2, window_bounds = array<i64: 1, 133>}, {transform_indices = @transform_3, window_bounds = array<i64: 16, 50>}, {transform_indices = @transform_4, window_bounds = array<i64: 16, 5>}]} {
    %c0 = arith.constant 0 : index
    %c0_0 = arith.constant 0 : index
    %0 = vector.load %arg1[%c0, %c0_0] : memref<16x32xbf16, #tpu.memory_space<vmem>>, vector<16x32xbf16>
    %c0_1 = arith.constant 0 : index
    %c0_2 = arith.constant 0 : index
    %1 = vector.load %arg2[%c0_1, %c0_2] : memref<32x133xbf16, #tpu.memory_space<vmem>>, vector<32x133xbf16>
    %cst = arith.constant dense<0.000000e+00> : vector<16x133xf32>
    %2 = tpu.matmul %0, %1, %cst {dimension_numbers = #tpu.dot_dimension_numbers<[1], [0], [0], [1], [0, 0, 1, 1], [], []>} : vector<16x32xbf16>, vector<32x133xbf16>, vector<16x133xf32> -> vector<16x133xf32>
    %c0_3 = arith.constant 0 : index
    %c0_4 = arith.constant 0 : index
    %3 = vector.load %arg3[%c0_3, %c0_4] : memref<1x133xf32, #tpu.memory_space<vmem>>, vector<1x133xf32>
    %4 = vector.broadcast %3 : vector<1x133xf32> to vector<16x133xf32>
    %5 = arith.addf %2, %4 : vector<16x133xf32>
    %6 = vector.extract_strided_slice %5 {offsets = [0, 0], sizes = [16, 128], strides = [1, 1]} : vector<16x133xf32> to vector<16x128xf32>
    %7 = vector.extract_strided_slice %5 {offsets = [0, 128], sizes = [16, 5], strides = [1, 1]} : vector<16x133xf32> to vector<16x5xf32>
    %cst_5 = arith.constant dense<0xFF800000> : vector<16xf32>
    %8 = vector.multi_reduction <maximumf>, %6, %cst_5 [1] : vector<16x128xf32> to vector<16xf32>
    %9 = vector.shape_cast %8 : vector<16xf32> to vector<16x1xf32>
    %10 = vector.broadcast %9 : vector<16x1xf32> to vector<16x128xf32>
    %11 = arith.subf %6, %10 : vector<16x128xf32>
    %12 = math.exp %11 : vector<16x128xf32>
    %cst_6 = arith.constant dense<0.000000e+00> : vector<16xf32>
    %13 = vector.multi_reduction <add>, %12, %cst_6 [1] : vector<16x128xf32> to vector<16xf32>
    %14 = vector.shape_cast %13 : vector<16xf32> to vector<16x1xf32>
    %15 = math.log %14 : vector<16x1xf32>
    %16 = vector.broadcast %15 : vector<16x1xf32> to vector<16x128xf32>
    %17 = arith.subf %11, %16 : vector<16x128xf32>
    %18 = vector.extract_strided_slice %17 {offsets = [0, 0], sizes = [16, 50], strides = [1, 1]} : vector<16x128xf32> to vector<16x50xf32>
    %c0_7 = arith.constant 0 : index
    %c0_8 = arith.constant 0 : index
    %19 = vector.load %arg4[%c0_7, %c0_8] : memref<16x50xf32, #tpu.memory_space<vmem>>, vector<16x50xf32>
    tpu.vector_store %arg4[%c0_7, %c0_8], %18 {strides = array<i32>} : memref<16x50xf32, #tpu.memory_space<vmem>>, vector<16x50xf32>,
    %cst_9 = arith.constant dense<0xFF800000> : vector<16xf32>
    %20 = vector.multi_reduction <maximumf>, %7, %cst_9 [1] : vector<16x5xf32> to vector<16xf32>
    %21 = vector.shape_cast %20 : vector<16xf32> to vector<16x1xf32>
    %22 = vector.broadcast %21 : vector<16x1xf32> to vector<16x5xf32>
    %23 = arith.subf %7, %22 : vector<16x5xf32>
    %24 = math.exp %23 : vector<16x5xf32>
    %cst_10 = arith.constant dense<0.000000e+00> : vector<16xf32>
    %25 = vector.multi_reduction <add>, %24, %cst_10 [1] : vector<16x5xf32> to vector<16xf32>
    %26 = vector.shape_cast %25 : vector<16xf32> to vector<16x1xf32>
    %27 = math.log %26 : vector<16x1xf32>
    %28 = vector.broadcast %27 : vector<16x1xf32> to vector<16x5xf32>
    %29 = arith.subf %23, %28 : vector<16x5xf32>
    %c0_11 = arith.constant 0 : index
    %c0_12 = arith.constant 0 : index
    %30 = vector.load %arg5[%c0_11, %c0_12] : memref<16x5xf32, #tpu.memory_space<vmem>>, vector<16x5xf32>
    tpu.vector_store %arg5[%c0_11, %c0_12], %29 {strides = array<i32>} : memref<16x5xf32, #tpu.memory_space<vmem>>, vector<16x5xf32>,
    return
  }
  func.func @transform_0(%arg0: i32) -> (i32, i32) {
    %c0_i32 = arith.constant 0 : i32
    %c0_i32_0 = arith.constant 0 : i32
    return %arg0, %c0_i32 : i32, i32
  }
  func.func @transform_1(%arg0: i32) -> (i32, i32) {
    %c0_i32 = arith.constant 0 : i32
    %c0_i32_0 = arith.constant 0 : i32
    %c0_i32_1 = arith.constant 0 : i32
    return %c0_i32, %c0_i32_0 : i32, i32
  }
  func.func @transform_2(%arg0: i32) -> (i32, i32) {
    %c0_i32 = arith.constant 0 : i32
    %c0_i32_0 = arith.constant 0 : i32
    %c0_i32_1 = arith.constant 0 : i32
    return %c0_i32, %c0_i32_0 : i32, i32
  }
  func.func @transform_3(%arg0: i32) -> (i32, i32) {
    %c0_i32 = arith.constant 0 : i32
    %c0_i32_0 = arith.constant 0 : i32
    return %arg0, %c0_i32 : i32, i32
  }
  func.func @transform_4(%arg0: i32) -> (i32, i32) {
    %c0_i32 = arith.constant 0 : i32
    %c0_i32_0 = arith.constant 0 : i32
    return %arg0, %c0_i32 : i32, i32
  }
}

</mosaic_0001>

<bundles_post_ra>
// kernel: tpu_custom_call.1
= control target key start
LH: loop header
LB: loop body
LE: loop exit
PB: predicated region body
PF: predicated region fallthrough
CT: control target
= control target key end

     0   :  { %10 = vsyncpa [#allocation3], 0  ;;  %s374_s0 = inlined_call_operand.hbm [shape: bf16[16,32], index: 0, kind: input, shape index: {}]   ;;  %s375_s1 = inlined_call_operand.hbm [shape: bf16[32,133], index: 1, kind: input, shape index: {}]   ;;  %s376_s2 = inlined_call_operand.vmem [shape: f32[1,133], index: 2, kind: input, shape index: {}]   ;;  %s377_s3 = inlined_call_operand.hbm [shape: f32[16,50], index: 3, kind: output, shape index: {0}]   ;;  %s378_s4 = inlined_call_operand.vmem [shape: f32[16,5], index: 4, kind: output, shape index: {1}]  }
   0x1   :  { %11 = vsyncpa [#allocation6], 0 }
   0x2   :  { %12 = vsyncpa [#allocation4], 0  ;;  %s311_s15 = smov [#allocation2]  }
   0x3   :  { %s18_s16 = sshll.u32 %s311_s15, 4  ;;  %s19_s16 = int_to_ptr.vmem [resolvable:$true] %s18_s16 }
   0x4   :  { %s253_s17 = scalar_lea.vmem %s19_s16, 128  ;;  %p258_p1 = scmp.lt.s32.totalorder %s19_s16, %s19_s16 }
   0x5   :  { %p254_p0 = scmp.ne.s32.totalorder %s19_s16, %s253_s17  ;;  %p259_p2 = scmp.lt.s32.totalorder %s253_s17, %s253_s17 }
   0x7   :  { %p260_p3 = por %p259_p2, %p258_p1 }
   0x9   :  { %p261_p4 = pnand %p260_p3, %p254_p0 }
   0xb   :  { %264 = shalt.err (!%p261_p4)
}
   0xc   :  { %s312_s18 = smov 64   ;;  %s313_s19 = smov 4  }
   0xd   :  { %24 = dma.hbm_to_vmem [thread:$0]  %s374_s0, 128, %s19_s16, [#allocation3], %s312_s18, %s312_s18, %s313_s19  }
   0xe   :  { %s314_s22 = smov [#allocation5]  }
   0xf   :  { %s30_s23 = sshll.u32 %s314_s22, 4  ;;  %s31_s23 = int_to_ptr.vmem [resolvable:$true] %s30_s23 }
  0x10   :  { %s273_s24 = scalar_lea.vmem %s31_s23, 512  ;;  %p278_p6 = scmp.lt.s32.totalorder %s31_s23, %s31_s23 }
  0x11   :  { %p274_p5 = scmp.ne.s32.totalorder %s31_s23, %s273_s24  ;;  %p279_p7 = scmp.lt.s32.totalorder %s273_s24, %s273_s24 }
  0x13   :  { %p280_p8 = por %p279_p7, %p278_p6 }
  0x15   :  { %p281_p9 = pnand %p280_p8, %p274_p5 }
  0x17   :  { %284 = shalt.err (!%p281_p9)
}
  0x18   :  { %s315_s25 = smov 128   ;;  %s316_s26 = smov 8  }
  0x19   :  { %36 = dma.hbm_to_vmem [thread:$0]  %s375_s1, 512, %s31_s23, [#allocation6], %s315_s25, %s315_s25, %s316_s26  }
  0x1a   :  { %305 = dma.done.wait [#allocation3], 128  }
  0x1b   :  { %306 = vsyncadd [#allocation3], 4294967168 }
  0x1c   :  { %307 = dma.done.wait [#allocation6], 512  }
  0x1d   :  { %308 = vsyncadd [#allocation6], 4294966784  ;;  %v317_v0 = vmov 0   ;;  %v222_v1 = vld [vmem:[#allocation5 + $0x14] ss:$8 sps:$4 sm:$0xff]   ;;  %vm89_vm0 = vcmask 261120   ;;  %v54_v6 = vlaneseq }
  0x1e   :  { %125 = vmatprep.mubr.bf16.mxu0 %v317_v0  ;;  %v224_v2 = vld [vmem:[#allocation5 + $0x10] ss:$8 sps:$4 sm:$0xff]   ;;  %105 = vmatprep.subr.bf16.mxu0 %v222_v1  ;;  %v225_v3 = vld [vmem:[#allocation5 + $0x4] ss:$8 sps:$4 sm:$0xff]   ;;  %v227_v4 = vld [vmem:[#allocation5] ss:$8 sps:$4 sm:$0xff]  }
  0x1f   :  { %106 = vmatpush1.bf16.msra.mxu0 %v224_v2  ;;  %v228_v5 = vld [vmem:[#allocation2] sm:$0xff]   ;;  %v55_v7 = vshrl.u32 %v54_v6, 7  ;;  %vm159_vm1 = vcmask 39936   ;;  %vm156_vm2 = vcmask 408576  }
  0x20   :  { %107 = vmatprep.subr.bf16.mxu0 %v225_v3  ;;  %v52_v9 = vld [vmem:[%s376_s2] sm:$0x3]  ;;  %s318_s2 = smov [#allocation7]  }
  0x21   :  { %v56_v8 = vsub.s32 0, %v55_v7  ;;  %v60_v10 = vsub.s32 1, %v55_v7  ;;  %s191_s29 = sshll.u32 %s318_s2, 4  ;;  %s192_s29 = int_to_ptr.vmem [resolvable:$true] %s191_s29 }
  0x22   :  { %s285_s6 = scalar_lea.vmem %s192_s29, 256  ;;  %p290_p11 = scmp.lt.s32.totalorder %s192_s29, %s192_s29 }
  0x23   :  { %108 = vmatpush1.bf16.msra.mxu0 %v227_v4  ;;  %v57_v11 = vrot.slane %v52_v9, %v56_v8  ;;  %v61_v12 = vrot.slane %v52_v9, %v60_v10  ;;  %p286_p10 = scmp.ne.s32.totalorder %s192_s29, %s285_s6  ;;  %p291_p12 = scmp.lt.s32.totalorder %s285_s6, %s285_s6 }
  0x25   :  { %p292_p13 = por %p291_p12, %p290_p11 }
  0x26   :  { %213 = vmatmul.mubr.msk.bf16.vlgmr.msra.gmra.mxu0 %vm89_vm0, %v228_v5 }
  0x27   :  { %p293_p0 = pnand %p292_p13, %p286_p10 }
  0xe6   :  { %v127_v13 = vpop.f32.mrf.mxu0 }
  0xe7   :  { %v128_v14 = vadd.f32 %v127_v13, %v57_v11 }
  0xe8   :  { %v129_v15 = vpop.f32.mrf.mxu0 }
  0xe9   :  { %v130_v16 = vadd.f32 %v129_v15, %v61_v12  ;;  %136 = vmax.xlane.f32.xlu0 %v128_v14 }
  0xea   :  { %v131_v17 = vpop.f32.mrf.mxu0 }
  0xeb   :  { %v132_v18 = vadd.f32 %v131_v17, %v57_v11  ;;  %v160_v19 = vsel %vm159_vm1, %v130_v16, -inf }
  0xec   :  { %v133_v20 = vpop.f32.mrf.mxu0  ;;  %161 = vmax.xlane.f32.xlu1 %v160_v19 }
  0xed   :  { %v134_v21 = vadd.f32 %v133_v20, %v61_v12  ;;  %138 = vmax.xlane.f32.xlu0 %v132_v18 }
  0xef   :  { %v163_v22 = vsel %vm159_vm1, %v134_v21, -inf }
  0xf0   :  { %164 = vmax.xlane.f32.xlu1 %v163_v22 }
 0x172   :  { %v137_v23 = vpop.xlane.xlu0 %136 }
 0x173   :  { %v140_v24 = vsub.f32 %v128_v14, %v137_v23 }
 0x175   :  { %v142_v25 = vmul.f32 1.442695, %v140_v24  ;;  %v162_v26 = vpop.xlane.xlu1 %161 }
 0x176   :  { %v166_v27 = vsub.f32 %v130_v16, %v162_v26  ;;  %v139_v28 = vpop.xlane.xlu0 %138 }
 0x177   :  { %229 = vpow2.f32 %v142_v25  ;;  %v141_v29 = vsub.f32 %v132_v18, %v139_v28 }
 0x178   :  { %v168_v30 = vmul.f32 1.442695, %v166_v27 }
 0x179   :  { %v144_v31 = vmul.f32 1.442695, %v141_v29  ;;  %v165_v32 = vpop.xlane.xlu1 %164 }
 0x17a   :  { %231 = vpow2.f32 %v168_v30  ;;  %v167_v33 = vsub.f32 %v134_v21, %v165_v32 }
 0x17b   :  { %233 = vpow2.f32 %v144_v31 }
 0x17c   :  { %v170_v34 = vmul.f32 1.442695, %v167_v33 }
 0x17e   :  { %235 = vpow2.f32 %v170_v34 }
 0x184   :  { %v230_v35 = vpop.eup %229 }
 0x185   :  { %146 = vadd.xlane.f32.xlu0 %v230_v35 }
 0x187   :  { %v232_v36 = vpop.eup %231 }
 0x188   :  { %v234_v37 = vpop.eup %233  ;;  %v172_v38 = vsel %vm159_vm1, %v232_v36, 0.0 }
 0x189   :  { %173 = vadd.xlane.f32.xlu0 %v172_v38  ;;  %148 = vadd.xlane.f32.xlu1 %v234_v37 }
 0x18b   :  { %v236_v39 = vpop.eup %235 }
 0x18c   :  { %v175_v40 = vsel %vm159_vm1, %v236_v39, 0.0 }
 0x18d   :  { %176 = vadd.xlane.f32.xlu1 %v175_v40 }
 0x20e   :  { %v147_v41 = vpop.xlane.xlu0 %146 }
 0x20f   :  { %237 = vlog2.f32 %v147_v41 }
 0x212   :  { %v149_v42 = vpop.xlane.xlu1 %148  ;;  %v174_v43 = vpop.xlane.xlu0 %173 }
 0x213   :  { %239 = vlog2.f32 %v149_v42 }
 0x214   :  { %241 = vlog2.f32 %v174_v43 }
 0x216   :  { %v177_v44 = vpop.xlane.xlu1 %176 }
 0x217   :  { %243 = vlog2.f32 %v177_v44 }
 0x21c   :  { %v238_v45 = vpop.eup %237 }
 0x21d   :  { %v151_v46 = vmul.f32 0.6931472, %v238_v45 }
 0x21f   :  { %v154_v47 = vsub.f32 %v140_v24, %v151_v46 }
 0x220   :  { %v240_v48 = vpop.eup %239 }
 0x221   :  { %v242_v49 = vpop.eup %241  ;;  %v153_v50 = vmul.f32 0.6931472, %v240_v48  ;;  %157 = vst.msk [vmem:[#allocation7] sm:$0xff] %vm156_vm2, %v154_v47 }
 0x222   :  { %v179_v51 = vmul.f32 0.6931472, %v242_v49 }
 0x223   :  { %v155_v52 = vsub.f32 %v141_v29, %v153_v50 }
 0x224   :  { %v244_v53 = vpop.eup %243  ;;  %v182_v54 = vsub.f32 %v166_v27, %v179_v51 }
 0x225   :  { %v181_v55 = vmul.f32 0.6931472, %v244_v53  ;;  %158 = vst.msk [vmem:[#allocation7 + $0x8] sm:$0xff] %vm156_vm2, %v155_v52 }
 0x226   :  { %184 = vst.msk [vmem:[%s378_s4] sm:$0xff] %vm159_vm1, %v182_v54 }
 0x227   :  { %296 = shalt.err (!%p293_p0)
}
 0x228   :  { %197 = dma.vmem_to_hbm [thread:$0]  %s192_s29, 256, %s377_s3, [#allocation4], %s315_s25, %s315_s25, %s316_s26   ;;  %v183_v56 = vsub.f32 %v167_v33, %v181_v55 }
 0x22a   :  { %185 = vst.msk [vmem:[%s378_s4 + $0x8] sm:$0xff] %vm159_vm1, %v183_v56 }
 0x22b   :  { %309 = dma.done.wait [#allocation4], 256  }
 0x22c   :  { %310 = vsyncadd [#allocation4], 4294967040 }
 0x22d   :  { %205 = vsyncpa [#allocation3], 1 }
 0x22e   :  { %206 = vsyncpa [#allocation6], 1 }
 0x22f   :  { %207 = vsyncpa [#allocation4], 1 }

</bundles_post_ra>
